<compile_context>
chip_gen: v7x
topology: tpu7x:2x2x1
jax: 0.10.0
libtpu: 0.0.40
codegen_flags: <defaults>
</compile_context>

<pallas_src>
import functools

import jax
import jax.numpy as jnp
from jax.experimental import pallas as pl
from jax.experimental.pallas import tpu as pltpu

NCH = 31          # number of spectral channels
XYDIM = 6         # positional-encoding channels (withposi=True, default args.mis)
NUM_FILTER = 64


# ----------------------------------------------------------------------------
# helpers
# ----------------------------------------------------------------------------
def _pick_lane_tile(n, cap=4096):
    """Largest lane tile <= cap that divides n and is a multiple of 128 (else full n)."""
    if n <= cap:
        return n
    t = (cap // 128) * 128
    while t >= 128:
        if n % t == 0:
            return t
        t -= 128
    return n


def _const_spec(shape):
    nd = len(shape)
    return pl.BlockSpec(shape, lambda *_: (0,) * nd)


# --- probe the pltpu.roll shift convention once (numpy-style vs reversed) ----
def _roll_probe_kernel(x_ref, o_ref):
    o_ref[...] = pltpu.roll(x_ref[...], 1, axis=1)


@functools.lru_cache(maxsize=None)
def _roll_shift_sign():
    x = jnp.broadcast_to(jnp.arange(128, dtype=jnp.float32), (8, 128))
    y = pl.pallas_call(_roll_probe_kernel,
                       out_shape=jax.ShapeDtypeStruct((8, 128), jnp.float32))(x)
    # numpy convention: out[i] = in[i - shift]  ->  out[0] == 127
    return 1 if float(y[0, 0]) > 64.0 else -1


# ----------------------------------------------------------------------------
# Pallas kernel 1: lane-dense block matmul for the ConvTConv transform
#   out[b] = ConvTConv^T (k2,k2) @ X[b] (k2, C*nb*nb)
# ----------------------------------------------------------------------------
def _blockmm_kernel(m_ref, x_ref, o_ref):
    o_ref[0] = jnp.dot(m_ref[...], x_ref[0], preferred_element_type=jnp.float32)


def block_matmul_T(mT, xT):
    B, k2, N = xT.shape
    TN = _pick_lane_tile(N)
    nt = N // TN
    dspec = pl.BlockSpec((1, k2, TN), lambda b, t: (b, 0, t))
    return pl.pallas_call(
        _blockmm_kernel,
        out_shape=jax.ShapeDtypeStruct((B, k2, N), jnp.float32),
        grid=(B, nt),
        in_specs=[pl.BlockSpec((k2, k2), lambda b, t: (0, 0)), dspec],
        out_specs=dspec,
        compiler_params=pltpu.CompilerParams(
            dimension_semantics=("parallel", "parallel")),
    )(mT, xT)


# ----------------------------------------------------------------------------
# Pallas kernel 2: gradient (data-fidelity) step, lane-tiled
#   g = PhiTPhi@x - Phiy + eta*(convxTx - convTz) + relu(lamda)*(x - v)
#   x_next = x - relu(alpha) * g
# ----------------------------------------------------------------------------
def _grad_step_kernel(scal_ref, ptp_ref, x_ref, v_ref, phiy_ref, ctz_ref, cxtx_ref, o_ref):
    lam = jnp.maximum(scal_ref[0], 0.0)
    alp = jnp.maximum(scal_ref[1], 0.0)
    eta = scal_ref[2]
    x = x_ref[0]                                                    # (31, TN)
    phitphix = jnp.dot(ptp_ref[...], x, preferred_element_type=jnp.float32)
    g = (phitphix - phiy_ref[0]
         + eta * (cxtx_ref[0] - ctz_ref[0])
         + lam * (x - v_ref[0]))
    o_ref[0] = x - alp * g


def grad_step(scalars, PhiTPhi, x, v, Phiy, convTz, convxTx):
    B, C, HW = x.shape
    TN = _pick_lane_tile(HW)
    nt = HW // TN
    dspec = pl.BlockSpec((1, C, TN), lambda b, t: (b, 0, t))
    return pl.pallas_call(
        _grad_step_kernel,
        out_shape=jax.ShapeDtypeStruct((B, C, HW), jnp.float32),
        grid=(B, nt),
        in_specs=[
            pl.BlockSpec(memory_space=pltpu.MemorySpace.SMEM),      # [lamda, alpha, eta]
            pl.BlockSpec((C, C), lambda b, t: (0, 0)),              # PhiTPhi (kept resident)
            dspec, dspec, dspec, dspec, dspec,                      # x, v, Phiy, convTz, convxTx
        ],
        out_specs=dspec,
        compiler_params=pltpu.CompilerParams(
            dimension_semantics=("parallel", "parallel")),
    )(scalars, PhiTPhi, x, v, Phiy, convTz, convxTx)


# ----------------------------------------------------------------------------
# Pallas kernel 3: fully fused ResBlock, channels-first (C, H*W) layout
#   5x conv3x3 (roll-shifted taps on the MXU) + bias + ReLU + residual add,
#   all inside one pallas_call per batch element.
# ----------------------------------------------------------------------------
def _resblock_kernel(x_ref, pos_ref,
                     w1x_ref, w1p_ref, b1_ref,
                     w2_ref, b2_ref, w3_ref, b3_ref, w4_ref, b4_ref,
                     w5_ref, b5_ref, o_ref, *, H, W, roll_sign):
    HW = H * W

    # boundary masks, built once per invocation from a lane iota
    lane = jax.lax.broadcasted_iota(jnp.int32, (1, HW), 1)
    h_idx = lane // W
    w_idx = lane - h_idx * W
    row_m = [jnp.where(h_idx > 0, 1.0, 0.0).astype(jnp.float32),       # tap reads h-1
             None,
             jnp.where(h_idx < H - 1, 1.0, 0.0).astype(jnp.float32)]   # tap reads h+1
    col_m = [jnp.where(w_idx > 0, 1.0, 0.0).astype(jnp.float32),       # tap reads w-1
             None,
             jnp.where(w_idx < W - 1, 1.0, 0.0).astype(jnp.float32)]   # tap reads w+1
    tap_mask = {}
    for kh in range(3):
        for kw in range(3):
            rm, cm = row_m[kh], col_m[kw]
            tap_mask[(kh, kw)] = rm if cm is None else (cm if rm is None else rm * cm)

    def shifted(val, off):
        # want s[p] = val[p + off] (wrap killed by the mask); XLU lane rotation
        if off == 0:
            return val
        return pltpu.roll(val, (roll_sign * (-off)) % HW, axis=1)

    def conv3x3(srcs, b_ref, relu):
        # srcs: list of (value (Cin, HW), weight ref (3, 3, Cout, Cin))
        cout = srcs[0][1].shape[2]
        acc = jnp.zeros((cout, HW), jnp.float32)
        for kh in range(3):
            for kw in range(3):
                off = (kh - 1) * W + (kw - 1)
                mask = tap_mask[(kh, kw)]
                for val, w_ref in srcs:
                    s = shifted(val, off)
                    if mask is not None:
                        s = s * mask
                    acc = acc + jnp.dot(w_ref[kh, kw], s,
                                        preferred_element_type=jnp.float32)
        acc = acc + b_ref[...]                                          # (Cout, 1) broadcast
        if relu:
            acc = jnp.maximum(acc, 0.0)
        return acc

    x = x_ref[0]                                                        # (31, HW)
    pos = pos_ref[0]                                                    # (6, HW)
    y = conv3x3([(x, w1x_ref), (pos, w1p_ref)], b1_ref, True)           # no concat needed
    y = conv3x3([(y, w2_ref)], b2_ref, True)
    y = conv3x3([(y, w3_ref)], b3_ref, True)
    y = conv3x3([(y, w4_ref)], b4_ref, True)
    y = conv3x3([(y, w5_ref)], b5_ref, False)
    o_ref[0] = x + y                                                    # input[:, 0:31] + output


def resblock_apply(x_flat, pos_flat, p, *, H, W):
    B, C, HW = x_flat.shape
    P = pos_flat.shape[1]
    kern = functools.partial(_resblock_kernel, H=H, W=W, roll_sign=_roll_shift_sign())
    xspec = pl.BlockSpec((1, C, HW), lambda b: (b, 0, 0))
    pspec = pl.BlockSpec((1, P, HW), lambda b: (b, 0, 0))
    weights = [p["w1x"], p["w1p"], p["b1"], p["w2"], p["b2"], p["w3"], p["b3"],
               p["w4"], p["b4"], p["w5"], p["b5"]]
    return pl.pallas_call(
        kern,
        out_shape=jax.ShapeDtypeStruct((B, C, HW), jnp.float32),
        grid=(B,),
        in_specs=[xspec, pspec] + [_const_spec(w.shape) for w in weights],
        out_specs=xspec,
        compiler_params=pltpu.CompilerParams(dimension_semantics=("parallel",)),
    )(x_flat, pos_flat, *weights)


# ----------------------------------------------------------------------------
# BasicStage forward (thin glue around the three Pallas kernels)
# ----------------------------------------------------------------------------
def basic_stage_forward(params, x, v, Phiy, PhiTPhi, convTz, ConvTConv, pos, *, ksz, imsz, eta):
    B = x.shape[0]
    C = NCH
    nb = imsz // ksz
    k2 = ksz * ksz
    HW = imsz * imsz

    # convxTx: block reorder (glue) + lane-dense (k2,k2)@(k2, C*nb*nb) in Pallas
    temp_xT = (x.reshape(B, C, nb, ksz, nb, ksz)
                 .transpose(0, 3, 5, 1, 2, 4)
                 .reshape(B, k2, C * nb * nb))
    cxT = block_matmul_T(jnp.transpose(ConvTConv.reshape(k2, k2)), temp_xT)
    convxTx = (cxT.reshape(B, ksz, ksz, C, nb, nb)
                  .transpose(0, 3, 4, 1, 5, 2)
                  .reshape(B, C, HW))

    # gradient step (PhiTPhi matmul + elementwise update) in Pallas, lane-tiled
    scalars = jnp.stack([params["lamda"][0, 0],
                         params["alpha"][0, 0],
                         jnp.asarray(eta, jnp.float32)]).astype(jnp.float32)
    x_next_flat = grad_step(scalars, PhiTPhi,
                            x.reshape(B, C, HW), v.reshape(B, C, HW),
                            Phiy.reshape(B, C, HW), convTz.reshape(B, C, HW),
                            convxTx)

    # denoising prior: two fully fused ResBlocks, channels-first flattened layout
    pos_flat = pos.reshape(B, pos.shape[1], HW)
    v1 = resblock_apply(x_next_flat, pos_flat, params["rb1"], H=imsz, W=imsz)
    v2 = resblock_apply(v1, pos_flat, params["rb2"], H=imsz, W=imsz)

    return x_next_flat.reshape(B, C, imsz, imsz), v2.reshape(B, C, imsz, imsz)


# ----------------------------------------------------------------------------
# Deterministic parameter initialization
# ----------------------------------------------------------------------------
def spectral_normalize(w, iters=30):
    # TODO(synk): PyTorch spectral_norm runs 1 power iteration per forward with persistent u;
    # here sigma is computed once at setup (fixed weights) — equivalent at inference.
    m = w.reshape(-1, w.shape[-1])
    vv = jnp.ones((m.shape[1],), jnp.float32) / jnp.sqrt(float(m.shape[1]))
    uu = jnp.zeros((m.shape[0],), jnp.float32)
    for _ in range(iters):
        uu = m @ vv
        uu = uu / (jnp.linalg.norm(uu) + 1e-12)
        vv = m.T @ uu
        vv = vv / (jnp.linalg.norm(vv) + 1e-12)
    sigma = jnp.dot(uu, m @ vv)
    return w / sigma


def init_resblock_params(key):
    cins = [NCH + XYDIM, NUM_FILTER, NUM_FILTER, NUM_FILTER, NUM_FILTER]
    couts = [NUM_FILTER, NUM_FILTER, NUM_FILTER, NUM_FILTER, NCH]
    keys = jax.random.split(key, 5)
    p = {}
    for i, (cin, cout, k) in enumerate(zip(cins, couts, keys), start=1):
        kw_, kb = jax.random.split(k)
        w = jax.random.normal(kw_, (3, 3, cin, cout), jnp.float32) / jnp.sqrt(9.0 * cin)
        w = spectral_normalize(w)                       # HWIO
        wk = jnp.transpose(w, (0, 1, 3, 2))             # kernel layout (3, 3, Cout, Cin)
        if i == 1:
            p["w1x"] = wk[..., :NCH]                    # x slab of conv1
            p["w1p"] = wk[..., NCH:]                    # pos slab of conv1
        else:
            p[f"w{i}"] = wk
        p[f"b{i}"] = (0.01 * jax.random.normal(kb, (cout,), jnp.float32)).reshape(cout, 1)
    return p


def init_params(key):
    k1, k2 = jax.random.split(key)
    return {
        "lamda": jnp.full((1, 1), 0.1, jnp.float32),
        "alpha": jnp.full((1, 1), 0.1, jnp.float32),
        "beta": jnp.full((1, 1), -100000.0, jnp.float32),   # unused in forward (as in PyTorch)
        "rb1": init_resblock_params(k1),
        "rb2": init_resblock_params(k2),
    }


# ----------------------------------------------------------------------------
# Pure-JAX reference (mirrors the PyTorch forward exactly) for validation
# ----------------------------------------------------------------------------
def _conv3x3_ref(x_nchw, w_hwio, b):
    out = jax.lax.conv_general_dilated(
        x_nchw, w_hwio, window_strides=(1, 1), padding=((1, 1), (1, 1)),
        dimension_numbers=("NCHW", "HWIO", "NCHW"),
        precision=jax.lax.Precision.HIGHEST)
    return out + b.reshape(1, -1, 1, 1)


def _rb_weights_hwio(p):
    w1 = jnp.concatenate([p["w1x"], p["w1p"]], axis=-1)          # (3,3,64,37) kernel layout
    ws = [w1, p["w2"], p["w3"], p["w4"], p["w5"]]
    ws = [jnp.transpose(w, (0, 1, 3, 2)) for w in ws]            # -> HWIO
    bs = [p[f"b{i}"].reshape(-1) for i in range(1, 6)]
    return ws, bs


def _resblock_ref(x, p):
    ws, bs = _rb_weights_hwio(p)
    y = x
    for i in range(4):
        y = jax.nn.relu(_conv3x3_ref(y, ws[i], bs[i]))
    y = _conv3x3_ref(y, ws[4], bs[4])
    return x[:, :NCH] + y


def stage_ref(params, x, v, Phiy, PhiTPhi, convTz, ConvTConv, pos, *, ksz, imsz, eta):
    B = x.shape[0]
    nb = imsz // ksz
    k2 = ksz * ksz
    temp_x = (x.reshape(B, NCH, nb, ksz, nb, ksz)
                .transpose(0, 1, 2, 4, 3, 5).reshape(-1, k2))
    convxTx = (jnp.matmul(temp_x, ConvTConv.reshape(k2, k2),
                          precision=jax.lax.Precision.HIGHEST)
               .reshape(B, NCH, nb, nb, ksz, ksz)
               .transpose(0, 1, 2, 4, 3, 5).reshape(B, NCH, imsz, imsz))
    PhiTPhix = jnp.einsum("ij,bjk->bik", PhiTPhi, x.reshape(B, NCH, imsz * imsz),
                          precision=jax.lax.Precision.HIGHEST).reshape(B, NCH, imsz, imsz)
    lam = jax.nn.relu(params["lamda"][0, 0])
    alp = jax.nn.relu(params["alpha"][0, 0])
    g = PhiTPhix - Phiy + eta * (convxTx - convTz) + lam * (x - v)
    x_next = x - alp * g
    v1 = _resblock_ref(jnp.concatenate([x_next, pos], axis=1), params["rb1"])
    v2 = _resblock_ref(jnp.concatenate([v1, pos], axis=1), params["rb2"])
    return x_next, v2


# ----------------------------------------------------------------------------
if __name__ == "__main__":
    B, IMSZ, KSZ, ETA = 2, 16, 4, 0.1
    key = jax.random.PRNGKey(0)
    ks = jax.random.split(key, 8)

    x = jax.random.normal(ks[0], (B, NCH, IMSZ, IMSZ), jnp.float32)
    v = jax.random.normal(ks[1], (B, NCH, IMSZ, IMSZ), jnp.float32)
    Phiy = jax.random.normal(ks[2], (B, NCH, IMSZ, IMSZ), jnp.float32)
    PhiTPhi = 0.1 * jax.random.normal(ks[3], (NCH, NCH), jnp.float32)
    convTz = jax.random.normal(ks[4], (B, NCH, IMSZ, IMSZ), jnp.float32)
    ConvTConv = 0.1 * jax.random.normal(ks[5], (KSZ * KSZ, KSZ * KSZ), jnp.float32)
    pos = jax.random.normal(ks[6], (B, XYDIM, IMSZ, IMSZ), jnp.float32)
    params = init_params(ks[7])

    _roll_shift_sign()   # resolve the roll convention outside of any trace

    fwd = jax.jit(functools.partial(basic_stage_forward, ksz=KSZ, imsz=IMSZ, eta=ETA))
    x_next, v_next = fwd(params, x, v, Phiy, PhiTPhi, convTz, ConvTConv, pos)
    jax.block_until_ready((x_next, v_next))

    xr, vr = stage_ref(params, x, v, Phiy, PhiTPhi, convTz, ConvTConv,
                       pos, ksz=KSZ, imsz=IMSZ, eta=ETA)
    jax.block_until_ready((xr, vr))

    def rel_err(a, b):
        return float(jnp.max(jnp.abs(a - b)) / (jnp.max(jnp.abs(b)) + 1e-6))

    assert x_next.shape == (B, NCH, IMSZ, IMSZ) and v_next.shape == (B, NCH, IMSZ, IMSZ)
    # kept loose vs the XLA conv reference (different MXU accumulation order)
    assert rel_err(x_next, xr) < 2e-2, f"x_next mismatch: {rel_err(x_next, xr)}"
    assert rel_err(v_next, vr) < 2e-2, f"v_next mismatch: {rel_err(v_next, vr)}"
    print("KERNEL_OK")
</pallas_src>

<mosaic_0001>
module attributes {stable_mosaic.version = 11 : i64} {
  func.func @_roll_probe_kernel(%arg0: memref<8x128xf32, #tpu.memory_space<vmem>>, %arg1: memref<8x128xf32, #tpu.memory_space<vmem>>) attributes {dimension_semantics = [], scalar_prefetch = 0 : i64, scratch_operands = 0 : i64, tpu.core_type = #tpu.core_type<tc>} {
    %c0 = arith.constant 0 : index
    %c0_0 = arith.constant 0 : index
    %0 = vector.load %arg0[%c0, %c0_0] : memref<8x128xf32, #tpu.memory_space<vmem>>, vector<8x128xf32>
    %c1_i32 = arith.constant 1 : i32
    %1 = tpu.dynamic_rotate %0 by %c1_i32 dim 1 : vector<8x128xf32>, i32 -> vector<8x128xf32>
    %c0_1 = arith.constant 0 : index
    %c0_2 = arith.constant 0 : index
    %2 = vector.load %arg1[%c0_1, %c0_2] : memref<8x128xf32, #tpu.memory_space<vmem>>, vector<8x128xf32>
    tpu.vector_store %arg1[%c0_1, %c0_2], %1 {strides = array<i32>} : memref<8x128xf32, #tpu.memory_space<vmem>>, vector<8x128xf32>,
    return
  }
}

</mosaic_0001>

<bundles_post_ra>
// kernel: tpu_custom_call.1
= control target key start
LH: loop header
LB: loop body
LE: loop exit
PB: predicated region body
PF: predicated region fallthrough
CT: control target
= control target key end

     0   :  { %6 = vsyncpa [#allocation3], 0  ;;  %s128_s0 = inlined_call_operand.hbm [shape: f32[8,128], index: 0, kind: input, shape index: {}]   ;;  %s129_s1 = inlined_call_operand.hbm [shape: f32[8,128], index: 1, kind: output, shape index: {}]  }
   0x1   :  { %7 = vsyncpa [#allocation4], 0  ;;  %s91_s6 = smov [#allocation2]   ;;  %s43_s10 = scalar_lea.hbm %s128_s0, 128 }
   0x2   :  { %s14_s7 = sshll.u32 %s91_s6, 4  ;;  %p44_p0 = scmp.ne.s32.totalorder %s128_s0, %s43_s10  ;;  %s15_s7 = int_to_ptr.vmem [resolvable:$true] %s14_s7 }
   0x3   :  { %p47_p1 = scmp.lt.u32.totalorder %s43_s10, %s128_s0 }
   0x5   :  { %p49_p2 = pnand %p47_p1, %p44_p0 }
   0x7   :  { %52 = shalt.err (!%p49_p2)
}
   0x8   :  { %s53_s15 = scalar_lea.vmem %s15_s7, 128  ;;  %p58_p4 = scmp.lt.s32.totalorder %s15_s7, %s15_s7 }
   0x9   :  { %p54_p3 = scmp.ne.s32.totalorder %s15_s7, %s53_s15  ;;  %p59_p5 = scmp.lt.s32.totalorder %s53_s15, %s53_s15 }
   0xb   :  { %p60_p6 = por %p59_p5, %p58_p4 }
   0xd   :  { %p61_p7 = pnand %p60_p6, %p54_p3 }
   0xf   :  { %64 = shalt.err (!%p61_p7)
}
  0x10   :  { %17 = dma.hbm_to_vmem [thread:$0]  %s128_s0, 128, %s15_s7, [#allocation3]  }
  0x11   :  { %87 = dma.done.wait [#allocation3], 128  }
  0x12   :  { %88 = vsyncadd [#allocation3], 4294967168  ;;  %v21_v0 = vld [vmem:[#allocation2] sm:$0xff]  ;;  %s92_s18 = smov 1   ;;  %s93_s19 = smov [#allocation5]  }
  0x13   :  { %22 = vrot.lane.b32.xlu0 %v21_v0, %s92_s18  ;;  %s31_s20 = sshll.u32 %s93_s19, 4  ;;  %s32_s20 = int_to_ptr.vmem [resolvable:$true] %s31_s20 }
  0x14   :  { %s65_s21 = scalar_lea.vmem %s32_s20, 128  ;;  %p70_p9 = scmp.lt.s32.totalorder %s32_s20, %s32_s20 }
  0x15   :  { %p66_p8 = scmp.ne.s32.totalorder %s32_s20, %s65_s21  ;;  %p71_p10 = scmp.lt.s32.totalorder %s65_s21, %s65_s21 }
  0x17   :  { %p72_p11 = por %p71_p10, %p70_p9 }
  0x19   :  { %p73_p12 = pnand %p72_p11, %p66_p8 }
  0x85   :  { %v23_v1 = vpop.permute.xlu0 %22 }
  0x86   :  { %24 = vst [vmem:[#allocation5] sm:$0xff] %v23_v1 }
  0x87   :  { %76 = shalt.err (!%p73_p12)
}
  0x88   :  { %s77_s0 = scalar_lea.hbm %s129_s1, 128 }
  0x89   :  { %p78_p13 = scmp.ne.s32.totalorder %s129_s1, %s77_s0  ;;  %p81_p0 = scmp.lt.u32.totalorder %s77_s0, %s129_s1 }
  0x8b   :  { %p83_p1 = pnand %p81_p0, %p78_p13 }
  0x8d   :  { %86 = shalt.err (!%p83_p1)
}
  0x8e   :  { %34 = dma.vmem_to_hbm [thread:$0]  %s32_s20, 128, %s129_s1, [#allocation4]  }
  0x8f   :  { %89 = dma.done.wait [#allocation4], 128  }
  0x90   :  { %90 = vsyncadd [#allocation4], 4294967168 }
  0x91   :  { %38 = vsyncpa [#allocation3], 1 }
  0x92   :  { %39 = vsyncpa [#allocation4], 1 }

</bundles_post_ra>
